<compile_context>
chip_gen: v7x
topology: tpu7x:2x2x1
jax: 0.10.0
libtpu: 0.0.40
codegen_flags: <defaults>
</compile_context>

<pallas_src>
import functools

import jax
import jax.numpy as jnp
import numpy as np
from jax import lax
from jax.experimental import pallas as pl
from jax.experimental.pallas import tpu as pltpu


def _ssa_kernel(x_ref, qk_ref, wov_ref, bov_ref, bo_ref, out_ref, *,
                block_b, height, width):
    # x_ref:   (BB, C, HW)  block_b images; channels on sublanes, pixels on lanes
    # qk_ref:  (BB, 1, C)   precomputed (W_q(sem) @ W_k) / sqrt(semantic_dim)
    # wov_ref: (C, C)       W_o @ W_v
    # bov_ref: (C, 1)       W_o @ b_v
    # bo_ref:  (C, 1)       b_o
    hw = height * width

    # Row-membership mask generated in-kernel (no seg/segt DMA): pixel p
    # belongs to image row r  <=>  r*W <= p < (r+1)*W.  No integer division.
    col = lax.broadcasted_iota(jnp.int32, (height, hw), 1)
    row = lax.broadcasted_iota(jnp.int32, (height, hw), 0)
    row_start = row * width
    seg = jnp.logical_and(col >= row_start, col < row_start + width)   # (H, HW)

    wov = wov_ref[...]
    bov = bov_ref[...]
    bo = bo_ref[...]
    neg = jnp.float32(-1e30)

    for bb in range(block_b):      # static unroll: independent per-image chains
        xb = x_ref[bb]                                                  # (C, HW)

        # Single fused projection Wo Wv x + Wo bv (was K, V and Wo matmuls).
        vb = jnp.dot(wov, xb, preferred_element_type=jnp.float32) + bov  # (C, HW)

        # scores = qk . x  (scale and q@Wk already folded into qk).
        sb = jnp.dot(qk_ref[bb], xb,
                     preferred_element_type=jnp.float32)                 # (1, HW)

        # Exact per-row softmax over the width axis, without reshapes:
        # scatter the (1, HW) scores into an (H, HW) masked layout, reduce
        # along lanes, then collapse the (all-but-one-zero) sublane axis.
        masked = jnp.where(seg, sb, neg)                                 # (H, HW)
        rowmax = jnp.max(masked, axis=-1, keepdims=True)                 # (H, 1)
        e = jnp.exp(masked - rowmax)                # exactly 0 outside the row
        rowsum = jnp.sum(e, axis=-1, keepdims=True)                      # (H, 1)
        wts = jnp.sum(e / rowsum, axis=0, keepdims=True)                 # (1, HW)

        out_ref[bb] = (xb + wts * vb + bo).astype(out_ref.dtype)


def _pick_block_b(batch):
    """Images per grid step: <=8 (fills f32 sublanes for the softmax block)
    and, when possible, keep >=2 grid steps so ("parallel",) can occupy both
    TensorCores on v7x; on v5e/v6e extra steps only add per-step overhead."""
    if batch <= 1:
        return 1
    upper = min(8, batch // 2)
    for bb in range(upper, 0, -1):
        if batch % bb == 0:
            return bb
    return 1


def spatial_semantic_attention(x_nchw, semantic_embedding, params):
    """Forward pass matching the PyTorch module. x_nchw: (B, C, H, W)."""
    b, c, h, w = x_nchw.shape
    sd = semantic_embedding.shape[1]
    hw = h * w
    bb = _pick_block_b(b)

    # NCHW kept native; (B, C, H, W) -> (B, C, H*W) is contiguous (free).
    x_flat = x_nchw.reshape(b, c, hw)

    # Algebraic folds (exact identities), done once per call in the wrapper:
    #   scores = q.(Wk x + bk)/sqrt(sd) = ((q Wk)/sqrt(sd)).x + const
    #     (the constant q.bk term is dropped: softmax over width is
    #      shift-invariant within each row)
    #   Wo(w * (Wv x + bv)) = w * (Wov x + bov),  Wov = Wo Wv, bov = Wo bv
    inv_scale = 1.0 / (float(sd) ** 0.5)
    q = semantic_embedding @ params["wq"].T + params["bq"]               # (B, C)
    qk = ((q @ params["wk"]) * inv_scale).reshape(b, 1, c).astype(jnp.float32)
    wov = (params["wo"] @ params["wv"]).astype(jnp.float32)              # (C, C)
    bov = (params["wo"] @ params["bv"]).reshape(c, 1).astype(jnp.float32)
    bo = params["bo"].reshape(c, 1).astype(jnp.float32)

    kernel = functools.partial(_ssa_kernel, block_b=bb, height=h, width=w)
    const2d = lambda i: (0, 0)

    # NOTE: the (bb, C, HW) blocks are tiny here (~tens of KiB); if reused at
    # production resolutions, re-derive bb / tile HW against the per-chip VMEM
    # budget (64 MiB on v7x) or set vmem_limit_bytes explicitly.
    out_flat = pl.pallas_call(
        kernel,
        grid=(b // bb,),
        in_specs=[
            pl.BlockSpec((bb, c, hw), lambda i: (i, 0, 0)),   # x (bb images)
            pl.BlockSpec((bb, 1, c), lambda i: (i, 0, 0)),    # qk (per-batch)
            pl.BlockSpec((c, c), const2d),                    # Wov
            pl.BlockSpec((c, 1), const2d),                    # bov
            pl.BlockSpec((c, 1), const2d),                    # bo
        ],
        out_specs=pl.BlockSpec((bb, c, hw), lambda i: (i, 0, 0)),
        out_shape=jax.ShapeDtypeStruct((b, c, hw), x_nchw.dtype),
        compiler_params=pltpu.CompilerParams(
            dimension_semantics=("parallel",)),
    )(x_flat, qk, wov, bov, bo)

    return out_flat.reshape(b, c, h, w)


def reference(x, sem, params):
    """Pure-JAX reference reproducing the PyTorch forward (NCHW)."""
    sd = sem.shape[1]
    q = sem @ params["wq"].T + params["bq"]                              # (B, C)
    Q = q[:, :, None, None]
    K = jnp.einsum("oc,bchw->bohw", params["wk"], x) + params["bk"][None, :, None, None]
    V = jnp.einsum("oc,bchw->bohw", params["wv"], x) + params["bv"][None, :, None, None]
    scores = jnp.sum(Q * K, axis=1, keepdims=True) / (float(sd) ** 0.5)
    weights = jax.nn.softmax(scores, axis=-1)
    attn = weights * V
    attn = jnp.einsum("oc,bchw->bohw", params["wo"], attn) + params["bo"][None, :, None, None]
    return x + attn


if __name__ == "__main__":
    B, C, H, W, SD = 2, 8, 16, 16, 32
    key = jax.random.PRNGKey(0)
    ks = jax.random.split(key, 10)

    x = jax.random.normal(ks[0], (B, C, H, W), jnp.float32)
    sem = jax.random.normal(ks[1], (B, SD), jnp.float32)

    params = {
        "wq": 0.1 * jax.random.normal(ks[2], (C, SD), jnp.float32),
        "bq": 0.1 * jax.random.normal(ks[3], (C,), jnp.float32),
        "wk": 0.1 * jax.random.normal(ks[4], (C, C), jnp.float32),
        "bk": 0.1 * jax.random.normal(ks[5], (C,), jnp.float32),
        "wv": 0.1 * jax.random.normal(ks[6], (C, C), jnp.float32),
        "bv": 0.1 * jax.random.normal(ks[7], (C,), jnp.float32),
        "wo": 0.1 * jax.random.normal(ks[8], (C, C), jnp.float32),
        "bo": 0.1 * jax.random.normal(ks[9], (C,), jnp.float32),
    }

    out = spatial_semantic_attention(x, sem, params)
    out = jax.block_until_ready(out)

    ref = reference(x, sem, params)
    assert out.shape == (B, C, H, W)
    # Algebraic folds change f32 rounding order slightly; tolerance reflects that.
    np.testing.assert_allclose(np.asarray(out), np.asarray(ref),
                               rtol=1e-4, atol=1e-5)
    print("KERNEL_OK")
</pallas_src>

<mosaic_0001>
module attributes {stable_mosaic.version = 11 : i64} {
  func.func @_ssa_kernel(%arg0: i32, %arg1: memref<1x8x256xf32, #tpu.memory_space<vmem>>, %arg2: memref<1x1x8xf32, #tpu.memory_space<vmem>>, %arg3: memref<8x8xf32, #tpu.memory_space<vmem>>, %arg4: memref<8x1xf32, #tpu.memory_space<vmem>>, %arg5: memref<8x1xf32, #tpu.memory_space<vmem>>, %arg6: memref<1x8x256xf32, #tpu.memory_space<vmem>>) attributes {dimension_semantics = [#tpu.dimension_semantics<parallel>], iteration_bounds = array<i64: 2>, scalar_prefetch = 0 : i64, scratch_operands = 0 : i64, tpu.core_type = #tpu.core_type<tc>, window_params = [{transform_indices = @transform_0, window_bounds = array<i64: 1, 8, 256>}, {transform_indices = @transform_1, window_bounds = array<i64: 1, 1, 8>}, {pipeline_mode = #tpu.pipeline_mode<synchronous>, transform_indices = @transform_2, window_bounds = array<i64: 8, 8>}, {pipeline_mode = #tpu.pipeline_mode<synchronous>, transform_indices = @transform_3, window_bounds = array<i64: 8, 1>}, {pipeline_mode = #tpu.pipeline_mode<synchronous>, transform_indices = @transform_4, window_bounds = array<i64: 8, 1>}, {transform_indices = @transform_5, window_bounds = array<i64: 1, 8, 256>}]} {
    %0 = tpu.iota {dimensions = array<i32: 1>} : vector<16x256xi32>
    %1 = tpu.iota {dimensions = array<i32: 0>} : vector<16x256xi32>
    %c16_i32 = arith.constant 16 : i32
    %2 = vector.broadcast %c16_i32 : i32 to vector<16x256xi32>
    %3 = arith.muli %1, %2 : vector<16x256xi32>
    %4 = arith.cmpi sge, %0, %3 : vector<16x256xi32>
    %c16_i32_0 = arith.constant 16 : i32
    %5 = vector.broadcast %c16_i32_0 : i32 to vector<16x256xi32>
    %6 = arith.addi %3, %5 : vector<16x256xi32>
    %7 = arith.cmpi slt, %0, %6 : vector<16x256xi32>
    %8 = arith.andi %4, %7 : vector<16x256xi1>
    %c0 = arith.constant 0 : index
    %c0_1 = arith.constant 0 : index
    %9 = vector.load %arg3[%c0, %c0_1] : memref<8x8xf32, #tpu.memory_space<vmem>>, vector<8x8xf32>
    %c0_2 = arith.constant 0 : index
    %c0_3 = arith.constant 0 : index
    %10 = vector.load %arg4[%c0_2, %c0_3] : memref<8x1xf32, #tpu.memory_space<vmem>>, vector<8x1xf32>
    %c0_4 = arith.constant 0 : index
    %c0_5 = arith.constant 0 : index
    %11 = vector.load %arg5[%c0_4, %c0_5] : memref<8x1xf32, #tpu.memory_space<vmem>>, vector<8x1xf32>
    %c0_6 = arith.constant 0 : index
    %c0_7 = arith.constant 0 : index
    %c0_8 = arith.constant 0 : index
    %12 = vector.load %arg1[%c0_6, %c0_7, %c0_8] : memref<1x8x256xf32, #tpu.memory_space<vmem>>, vector<1x8x256xf32>
    %13 = vector.shape_cast %12 : vector<1x8x256xf32> to vector<8x256xf32>
    %cst = arith.constant dense<0.000000e+00> : vector<8x256xf32>
    %14 = tpu.matmul %9, %13, %cst {dimension_numbers = #tpu.dot_dimension_numbers<[1], [0], [0], [1], [0, 0, 1, 1], [], []>} : vector<8x8xf32>, vector<8x256xf32>, vector<8x256xf32> -> vector<8x256xf32>
    %15 = vector.broadcast %10 : vector<8x1xf32> to vector<8x256xf32>
    %16 = arith.addf %14, %15 : vector<8x256xf32>
    %c0_9 = arith.constant 0 : index
    %c0_10 = arith.constant 0 : index
    %c0_11 = arith.constant 0 : index
    %17 = vector.load %arg2[%c0_9, %c0_10, %c0_11] : memref<1x1x8xf32, #tpu.memory_space<vmem>>, vector<1x1x8xf32>
    %18 = vector.shape_cast %17 : vector<1x1x8xf32> to vector<1x8xf32>
    %cst_12 = arith.constant dense<0.000000e+00> : vector<1x256xf32>
    %19 = tpu.matmul %18, %13, %cst_12 {dimension_numbers = #tpu.dot_dimension_numbers<[1], [0], [0], [1], [0, 0, 1, 1], [], []>} : vector<1x8xf32>, vector<8x256xf32>, vector<1x256xf32> -> vector<1x256xf32>
    %cst_13 = arith.constant -1.000000e+30 : f32
    %20 = vector.shape_cast %19 : vector<1x256xf32> to vector<1x256xf32>
    %21 = vector.broadcast %20 : vector<1x256xf32> to vector<16x256xf32>
    %22 = vector.broadcast %cst_13 : f32 to vector<16x256xf32>
    %23 = arith.select %8, %21, %22 : vector<16x256xi1>, vector<16x256xf32>
    %cst_14 = arith.constant dense<0xFF800000> : vector<16xf32>
    %24 = vector.multi_reduction <maximumf>, %23, %cst_14 [1] : vector<16x256xf32> to vector<16xf32>
    %25 = vector.shape_cast %24 : vector<16xf32> to vector<16x1xf32>
    %26 = vector.broadcast %25 : vector<16x1xf32> to vector<16x256xf32>
    %27 = arith.subf %23, %26 : vector<16x256xf32>
    %28 = math.exp %27 : vector<16x256xf32>
    %cst_15 = arith.constant dense<0.000000e+00> : vector<16xf32>
    %29 = vector.multi_reduction <add>, %28, %cst_15 [1] : vector<16x256xf32> to vector<16xf32>
    %30 = vector.shape_cast %29 : vector<16xf32> to vector<16x1xf32>
    %31 = vector.broadcast %30 : vector<16x1xf32> to vector<16x256xf32>
    %32 = arith.divf %28, %31 : vector<16x256xf32>
    %cst_16 = arith.constant dense<0.000000e+00> : vector<256xf32>
    %33 = vector.multi_reduction <add>, %32, %cst_16 [0] : vector<16x256xf32> to vector<256xf32>
    %34 = vector.shape_cast %33 : vector<256xf32> to vector<1x256xf32>
    %35 = vector.broadcast %34 : vector<1x256xf32> to vector<8x256xf32>
    %36 = arith.mulf %35, %16 : vector<8x256xf32>
    %37 = arith.addf %13, %36 : vector<8x256xf32>
    %38 = vector.broadcast %11 : vector<8x1xf32> to vector<8x256xf32>
    %39 = arith.addf %37, %38 : vector<8x256xf32>
    %c0_17 = arith.constant 0 : index
    %c0_18 = arith.constant 0 : index
    %c0_19 = arith.constant 0 : index
    %40 = vector.load %arg6[%c0_17, %c0_18, %c0_19] : memref<1x8x256xf32, #tpu.memory_space<vmem>>, vector<1x8x256xf32>
    %41 = vector.shape_cast %40 : vector<1x8x256xf32> to vector<8x256xf32>
    %42 = vector.shape_cast %39 : vector<8x256xf32> to vector<1x8x256xf32>
    tpu.vector_store %arg6[%c0_17, %c0_18, %c0_19], %42 {strides = array<i32>} : memref<1x8x256xf32, #tpu.memory_space<vmem>>, vector<1x8x256xf32>,
    return
  }
  func.func @transform_0(%arg0: i32) -> (i32, i32, i32) {
    %c0_i32 = arith.constant 0 : i32
    %c0_i32_0 = arith.constant 0 : i32
    %c0_i32_1 = arith.constant 0 : i32
    return %arg0, %c0_i32, %c0_i32_0 : i32, i32, i32
  }
  func.func @transform_1(%arg0: i32) -> (i32, i32, i32) {
    %c0_i32 = arith.constant 0 : i32
    %c0_i32_0 = arith.constant 0 : i32
    %c0_i32_1 = arith.constant 0 : i32
    return %arg0, %c0_i32, %c0_i32_0 : i32, i32, i32
  }
  func.func @transform_2(%arg0: i32) -> (i32, i32) {
    %c0_i32 = arith.constant 0 : i32
    %c0_i32_0 = arith.constant 0 : i32
    %c0_i32_1 = arith.constant 0 : i32
    return %c0_i32, %c0_i32_0 : i32, i32
  }
  func.func @transform_3(%arg0: i32) -> (i32, i32) {
    %c0_i32 = arith.constant 0 : i32
    %c0_i32_0 = arith.constant 0 : i32
    %c0_i32_1 = arith.constant 0 : i32
    return %c0_i32, %c0_i32_0 : i32, i32
  }
  func.func @transform_4(%arg0: i32) -> (i32, i32) {
    %c0_i32 = arith.constant 0 : i32
    %c0_i32_0 = arith.constant 0 : i32
    %c0_i32_1 = arith.constant 0 : i32
    return %c0_i32, %c0_i32_0 : i32, i32
  }
  func.func @transform_5(%arg0: i32) -> (i32, i32, i32) {
    %c0_i32 = arith.constant 0 : i32
    %c0_i32_0 = arith.constant 0 : i32
    %c0_i32_1 = arith.constant 0 : i32
    return %arg0, %c0_i32, %c0_i32_0 : i32, i32, i32
  }
}

</mosaic_0001>

<bundles_post_ra>
// kernel: tpu_custom_call.1
= control target key start
LH: loop header
LB: loop body
LE: loop exit
PB: predicated region body
PF: predicated region fallthrough
CT: control target
= control target key end

     0   :  { %10 = vsyncpa [#allocation3], 0  ;;  %s1001_s0 = inlined_call_operand.hbm [shape: f32[2,8,256], index: 0, kind: input, shape index: {}]   ;;  %s1002_s1 = inlined_call_operand.vmem [shape: f32[2,1,8], index: 1, kind: input, shape index: {}]   ;;  %s1003_s2 = inlined_call_operand.vmem [shape: f32[8,8], index: 2, kind: input, shape index: {}]   ;;  %s1004_s3 = inlined_call_operand.vmem [shape: f32[8,1], index: 3, kind: input, shape index: {}]   ;;  %s1005_s4 = inlined_call_operand.vmem [shape: f32[8,1], index: 4, kind: input, shape index: {}]   ;;  %s1006_s5 = inlined_call_operand.hbm [shape: f32[2,8,256], index: 5, kind: output, shape index: {}]  }
   0x1   :  { %12 = vsyncpa [#allocation3 + $0x1], 0 }
   0x2   :  { %13 = vsyncpa [#allocation4], 0 }
   0x3   :  { %15 = vsyncpa [#allocation4 + $0x1], 0  ;;  %s812_s18 = smov 0   ;;  %s814_s19 = smov 0  }
   0x4   :  { %s816_s20 = smov 0   ;;  %s818_s21 = smov 0  }
   0x5 LB: > { %s833_s22 = sadd.s32 4294967295, %s776_s21   ;;  %s600_s23 = sadd.s32 4294967294, %s776_s21   ;;  %s776_s21 = sphi %s818_s21, %s1021_s21   ;;  %s772_s20 = sphi %s816_s20, %s1020_s20   ;;  %s768_s19 = sphi %s814_s19, %s1019_s19   ;;  %s764_s18 = sphi %s812_s18, %s1018_s18  }
   0x6   : > { %s837_s24 = sadd.s32 1, %s776_s21   ;;  %s28_s25 = sadd.s32 1, %s772_s20 }
   0x7   : > { %s25_s26 = ssub.s32 %s776_s21, %s837_s24  ;;  %p35_p0 = scmp.ne.s32.totalorder %s772_s20, %s768_s19 }
   0x8   : > { %p26_p1 = scmp.eq.s32.totalorder %s25_s26, 0  ;;  %p36_p2 = scmp.eq.s32.totalorder %s776_s21, 0 }
   0x9   : > { %p41_p3 = scmp.ne.s32.totalorder %s768_s19, %s764_s18  ;;  %p42_p4 = scmp.eq.s32.totalorder %s833_s22, 0 }
   0xa   : > { %s849_s27 = scalar_select %p26_p1, %s772_s20, %s28_s25  }
   0xb   : > { %p851_p5 = por %p36_p2, %p35_p0  ;;  %p855_p6 = por %p42_p4, %p41_p3 }
   0xc   : > { %p154_p7 = scmp.eq.s32.totalorder %s833_s22, 1  ;;  %p160_p8 = scmp.eq.s32.totalorder %s600_s23, 1 }
   0xd   : > { %p630_p10 = scmp.lt.s32.totalorder %s776_s21, 2  ;;  %s189_s7 = sand.u32 1, %s772_s20  }
   0xe   : > { %p862_p11 = por %p154_p7, %p35_p0  ;;  %p866_p12 = por %p160_p8, %p41_p3 }
   0xf   : > { %s616_s8 = sshll.u32 %s776_s21, 8  ;;  %s603_s9 = sshll.u32 %s189_s7, 4 }
  0x10   : > { %s1010_s30 = scalar_select %p862_p11, 1, 0 }
  0x11   : > { %s1011_s6 = scalar_select %p866_p12, 1, 0 }
  0x12   : > { %s875_s12 = scalar_lea.hbm %s1001_s0, %s616_s8  ;;  %s193_s13 = scalar_lea.vmem [#allocation2], %s603_s9 }
  0x13   : > { %s201_s14 = sshll.u32 %s193_s13, 4  ;;  %p879_p13 = pnand %p630_p10, %p851_p5  ;;  %s883_s14 = int_to_ptr.vmem [resolvable:$true] %s201_s14 }
  0x14   : > { %s190_s16 = scalar_lea.sflag [#allocation3], %s189_s7  ;;  %s680_s17 = scalar_lea.hbm %s875_s12, 256 }
  0x15   : > { %p681_p2 = scmp.ne.s32.totalorder %s875_s12, %s680_s17  ;;  %p682_p3 = pneg %p879_p13 }
  0x16   : > { %s685_s26 = scalar_lea.hbm %s1001_s0, 512  ;;  %p686_p5 = scmp.lt.u32.totalorder %s875_s12, %s1001_s0 }
  0x17   : > { %p683_p4 = pnand %p682_p3, %p681_p2  ;;  %p687_p8 = scmp.lt.u32.totalorder %s685_s26, %s680_s17 }
  0x18   : > { %p689_p9 = scmp.lt.u32.totalorder %s680_s17, %s875_s12 }
  0x19   : > { %p684_p7 = pneg %p683_p4  ;;  %p688_p10 = por %p687_p8, %p686_p5 }
  0x1b   : > { %p690_p0 = por %p689_p9, %p688_p10 }
  0x1d   : > { %p691_p1 = pnand %p690_p0, %p684_p7 }
  0x1f   : > { %694 = shalt.err (!%p691_p1)
}
  0x20   : > { %s695_s7 = scalar_lea.vmem %s883_s14, 256  ;;  %s778_s9 = smov [#allocation2]  }
  0x21   : > { %p696_p2 = scmp.ne.s32.totalorder %s883_s14, %s695_s7  ;;  %s700_s10 = sshll.u32 %s778_s9, 4  ;;  %s701_s10 = int_to_ptr.vmem [resolvable:$false] %s700_s10 }
  0x22   : > { %s702_s11 = scalar_lea.vmem %s701_s10, 512  ;;  %p703_p11 = scmp.lt.s32.totalorder %s883_s14, %s701_s10 }
  0x23   : > { %p698_p4 = pnand %p696_p2, %p682_p3  ;;  %p704_p5 = scmp.lt.s32.totalorder %s702_s11, %s695_s7 }
  0x25   : > { %p699_p12 = pneg %p698_p4  ;;  %p705_p8 = por %p704_p5, %p703_p11 }
  0x27   : > { %p706_p9 = pnand %p705_p8, %p699_p12 }
  0x29   : > { %709 = shalt.err (!%p706_p9)
}
  0x2a   : > { %625 = dma.hbm_to_vmem [thread:$0]  (!%p879_p13), %s875_s12, 256, %s883_s14, %s190_s16  }
  0x2b   : > { %p1013_p0 = scmp.lt.s32.totalorder %s776_s21, 3  ;;  %p1014_p1 = scmp.ge.s32.totalorder %s776_s21, 1 }
  0x2d   : > { %p213_p3 = pnand %p1014_p1, %p1013_p0 }
  0x2e   : > { %s917_s13 = sand.u32 (!%p213_p3), 1, %s768_s19  }
  0x2f   : > { %216 = sbr.rel (%p213_p3) target bundleno = 632 (0x278), region = 40  ;;  %s607_s17 = sshll.u32 (!%p213_p3), %s917_s13, 4 }
  0x30   : > { %s219_s23 = scalar_lea.sflag (!%p213_p3), [#allocation3], %s917_s13  ;;  %s222_s15 = scalar_lea.vmem (!%p213_p3), [#allocation2], %s607_s17 }
  0x36   : > { %755 = dma.done.wait (%p855_p6), %s219_s23, 256  }
  0x37   : > { %757 = vsyncadd (%p855_p6), %s219_s23, 4294967040  ;;  %p252_p11 = scmp.lt.s32.totalorder %s833_s22, 1  ;;  %v779_v0 = vmov 0.0   ;;  %v932_v1 = vld [vmem:[%s222_s15 + $0x8] sm:$0xff]  ;;  %v934_v2 = vld [vmem:[%s222_s15] sm:$0xff]  ;;  %vm287_vm0 = vcmask 64512   ;;  %v255_v5 = vlaneseq }
  0x38   : > { %430 = vmatprep.mubr.f32.mxu1 %v779_v0  ;;  %355 = vmatprep.mubr.f32.mxu0 %v779_v0  ;;  %v277_v4 = vld [vmem:[%s1003_s2] sm:$0xff]  ;;  %v780_v26 = vmov 0   ;;  %s617_s10 = sshll.u32 %s833_s22, 8  ;;  %s251_s11 = scalar_lea.vmem [#allocation5], %s607_s17 }
  0x39   : > { %s253_s12 = scalar_select %p252_p11, %s833_s22, 1  ;;  %366 = vmatprep.subr.mxu1 %v932_v1  ;;  %291 = vmatprep.subr.mxu0 %v932_v1  ;;  %v259_v6 = vshrl.u32 %v255_v5, 7  ;;  %v256_v9 = vand.u32 127, %v255_v5  ;;  %v278_v25 = vld [vmem:[%s1004_s3] sm:$0xff] }
  0x3a   : > { %367 = vmatpush1.msra.mxu1 %v934_v2  ;;  %292 = vmatpush1.msra.mxu0 %v934_v2  ;;  %v279_v43 = vld [vmem:[%s1005_s4] sm:$0xff]  ;;  %s521_s23 = sshll.u32 %s251_s11, 4  ;;  %s957_s14 = scalar_lea.hbm %s1006_s5, %s617_s10  ;;  %s959_s23 = int_to_ptr.vmem [resolvable:$true] %s521_s23 }
  0x3b   : > { %s254_s25 = scalar_lea.vmem %s1002_s1, %s253_s12  ;;  %609 = vmatmul.mubr.msk.f32.vlgmr.msra.gmra.mrb[0].mxu0 %vm287_vm0, %v277_v4  ;;  %v260_v7 = vadd.s32 8, %v259_v6  ;;  %v261_v8 = vmul.u32 16, %v259_v6  ;;  %v257_v12 = vadd.s32 128, %v256_v9  ;;  %v439_v14 = vsub.s32 0, %v259_v6  ;;  %666 = vset.pattern.permute.xlu0 %v780_v26  ;;  %s507_s22 = scalar_lea.sflag [#allocation4], %s917_s13 }
  0x3c   : > { %v362_v3 = vld [vmem:[%s254_s25] sm:$0x1]  ;;  %667 = vset.pattern.permute.xlu1 %v780_v26  ;;  %s710_s17 = scalar_lea.vmem %s959_s23, 256  ;;  %p1015_p12 = scmp.ne.s32.totalorder %s1010_s30, 0 }
  0x3d   : > { %610 = vmatmul.mubr.msk.f32.vlgmr.msra.gmra.mrb[0].mxu1 %vm287_vm0, %v362_v3  ;;  %v262_v10 = vmul.u32 16, %v260_v7  ;;  %v267_v11 = vadd.s32 16, %v261_v8  ;;  %vm263_vm1 = vcmp.ge.s32.totalorder %v256_v9, %v261_v8  ;;  %vm264_vm3 = vcmp.ge.s32.totalorder %v257_v12, %v261_v8  ;;  %p711_p6 = scmp.ne.s32.totalorder %s959_s23, %s710_s17  ;;  %s781_s16 = smov [#allocation5]  }
  0x3e   : > { %s714_s25 = sshll.u32 %s781_s16, 4  ;;  %s715_s25 = int_to_ptr.vmem [resolvable:$false] %s714_s25 }
  0x3f   : > { %v268_v13 = vadd.s32 16, %v262_v10  ;;  %vm269_vm2 = vcmp.lt.s32.totalorder %v256_v9, %v267_v11  ;;  %vm270_vm4 = vcmp.lt.s32.totalorder %v257_v12, %v267_v11  ;;  %vm265_vm5 = vcmp.ge.s32.totalorder %v256_v9, %v262_v10  ;;  %p712_p13 = pnand %p711_p6, %p1015_p12  ;;  %s716_s29 = scalar_lea.vmem %s715_s25, 512 }
  0x40   : > { %vm273_vm7 = vmand %vm263_vm1, %vm269_vm2  ;;  %vm266_vm8 = vcmp.ge.s32.totalorder %v257_v12, %v262_v10  ;;  %p717_p10 = scmp.lt.s32.totalorder %s959_s23, %s715_s25  ;;  %p718_p2 = scmp.lt.s32.totalorder %s716_s29, %s710_s17 }
  0x41   : > { %vm271_vm6 = vcmp.lt.s32.totalorder %v256_v9, %v268_v13  ;;  %vm272_vm9 = vcmp.lt.s32.totalorder %v257_v12, %v268_v13  ;;  %vm274_vm10 = vmand %vm264_vm3, %vm270_vm4  ;;  %p713_p7 = pneg %p712_p13 }
  0x42   : > { %vm275_vm11 = vmand %vm265_vm5, %vm271_vm6  ;;  %p719_p4 = por %p718_p2, %p717_p10 }
  0x43   : > { %vm276_vm12 = vmand %vm266_vm8, %vm272_vm9 }
  0x44   : > { %p720_p5 = pnand %p719_p4, %p713_p7 }
 0x10e   : > { %v357_v44 = vpop.f32.mrb[0].mxu0 }
 0x10f   : > { %v359_v45 = vpop.f32.mrb[1].mxu0 }
 0x110   : > { %v432_v15 = vpop.f32.mrb[0].mxu1 }
 0x111   : > { %v440_v16 = vrot.slane %v432_v15, %v439_v14  ;;  %v434_v17 = vpop.f32.mrb[1].mxu1 }
 0x112   : > { %v444_v18 = vrot.slane %v434_v17, %v439_v14 }
 0x113   : > { %v445_v19 = vsel %vm273_vm7, %v440_v16, -1e+30  ;;  %v447_v22 = vsel %vm275_vm11, %v440_v16, -1e+30 }
 0x114   : > { %v446_v20 = vsel %vm274_vm10, %v444_v18, -1e+30  ;;  %v448_v23 = vsel %vm276_vm12, %v444_v18, -1e+30 }
 0x115   : > { %v449_v21 = vmax.f32 %v445_v19, %v446_v20  ;;  %v452_v24 = vmax.f32 %v447_v22, %v448_v23 }
 0x117   : > { %450 = vmax.xlane.f32.xlu0 %v449_v21 }
 0x11b   : > { %453 = vmax.xlane.f32.xlu0 %v452_v24 }
 0x131   : > { %284 = vperm.xlu0 %666, %v278_v25  }
 0x1a4   : > { %v451_v27 = vpop.xlane.xlu0 %450 }
 0x1a5   : > { %v455_v28 = vsub.f32 %v445_v19, %v451_v27  ;;  %v456_v29 = vsub.f32 %v446_v20, %v451_v27 }
 0x1a7   : > { %v459_v30 = vmul.f32 1.442695, %v455_v28  ;;  %v461_v31 = vmul.f32 1.442695, %v456_v29 }
 0x1a8   : > { %v454_v32 = vpop.xlane.xlu0 %453 }
 0x1a9   : > { %668 = vpow2.f32 %v459_v30  ;;  %v457_v33 = vsub.f32 %v447_v22, %v454_v32  ;;  %v458_v34 = vsub.f32 %v448_v23, %v454_v32 }
 0x1aa   : > { %670 = vpow2.f32 %v461_v31 }
 0x1ab   : > { %v463_v35 = vmul.f32 1.442695, %v457_v33  ;;  %v465_v36 = vmul.f32 1.442695, %v458_v34 }
 0x1ad   : > { %672 = vpow2.f32 %v463_v35 }
 0x1ae   : > { %674 = vpow2.f32 %v465_v36 }
 0x1b0   : > { %v285_v62 = vpop.permute.xlu0 %284 }
 0x1b1   : > { %v358_v4 = vadd.f32 %v357_v44, %v285_v62  ;;  %v360_v5 = vadd.f32 %v359_v45, %v285_v62 }
 0x1b3   : > { %v669_v37 = vpop.eup %668 }
 0x1b4   : > { %v671_v38 = vpop.eup %670 }
 0x1b5   : > { %v467_v39 = vadd.f32 %v671_v38, %v669_v37 }
 0x1b7   : > { %v673_v40 = vpop.eup %672  ;;  %468 = vadd.xlane.f32.xlu1 %v467_v39 }
 0x1b8   : > { %v675_v41 = vpop.eup %674 }
 0x1b9   : > { %v470_v42 = vadd.f32 %v675_v41, %v673_v40 }
 0x1bb   : > { %471 = vadd.xlane.f32.xlu1 %v470_v42 }
 0x1cc   : > { %499 = vperm.xlu1 %667, %v279_v43  }
 0x244   : > { %v469_v46 = vpop.xlane.xlu1 %468 }
 0x245   : > { %676 = vrcp.f32 %v469_v46 }
 0x248   : > { %v472_v47 = vpop.xlane.xlu1 %471 }
 0x249   : > { %678 = vrcp.f32 %v472_v47 }
 0x24c   : > { %v500_v11 = vpop.permute.xlu1 %499 }
 0x24f   : > { %v677_v48 = vpop.eup %676 }
 0x250   : > { %v474_v50 = vmul.f32 %v677_v48, %v669_v37  ;;  %v475_v51 = vmul.f32 %v677_v48, %v671_v38 }
 0x253   : > { %v679_v49 = vpop.eup %678 }
 0x254   : > { %v477_v52 = vmul.f32 %v679_v49, %v673_v40  ;;  %v478_v53 = vmul.f32 %v679_v49, %v675_v41 }
 0x256   : > { %v479_v54 = vadd.f32 %v477_v52, %v474_v50  ;;  %v486_v55 = vadd.f32 %v478_v53, %v475_v51 }
 0x258   : > { %v480_v56 = vrot.slane %v479_v54, 4  ;;  %v487_v57 = vrot.slane %v486_v55, 4 }
 0x25a   : > { %v481_v58 = vadd.f32 %v480_v56, %v479_v54  ;;  %v488_v59 = vadd.f32 %v487_v57, %v486_v55 }
 0x25c   : > { %v482_v60 = vrot.slane %v481_v58, 2  ;;  %v489_v61 = vrot.slane %v488_v59, 2 }
 0x25e   : > { %v483_v63 = vadd.f32 %v482_v60, %v481_v58  ;;  %v490_v0 = vadd.f32 %v489_v61, %v488_v59 }
 0x260   : > { %v484_v3 = vrot.slane %v483_v63, 1  ;;  %v491_v6 = vrot.slane %v490_v0, 1 }
 0x262   : > { %v485_v7 = vadd.f32 %v484_v3, %v483_v63  ;;  %v492_v8 = vadd.f32 %v491_v6, %v490_v0 }
 0x264   : > { %v493_v9 = vmul.f32 %v485_v7, %v358_v4  ;;  %v494_v10 = vmul.f32 %v492_v8, %v360_v5 }
 0x266   : > { %v495_v12 = vadd.f32 %v493_v9, %v934_v2  ;;  %v496_v13 = vadd.f32 %v494_v10, %v932_v1 }
 0x268   : > { %v502_v14 = vadd.f32 %v500_v11, %v495_v12  ;;  %v503_v15 = vadd.f32 %v500_v11, %v496_v13 }
 0x26a   : > { %504 = vst [vmem:[%s251_s11] sm:$0xff] %v502_v14  ;;  %505 = vst [vmem:[%s251_s11 + $0x8] sm:$0xff] %v503_v15 }
 0x26b   : > { %723 = shalt.err (!%p720_p5)
}
 0x26c   : > { %s724_s13 = scalar_lea.hbm %s957_s14, 256  ;;  %s728_s8 = scalar_lea.hbm %s1006_s5, 512 }
 0x26d   : > { %p725_p8 = scmp.ne.s32.totalorder %s957_s14, %s724_s13  ;;  %p729_p1 = scmp.lt.u32.totalorder %s957_s14, %s1006_s5 }
 0x26e   : > { %p730_p3 = scmp.lt.u32.totalorder %s728_s8, %s724_s13  ;;  %p732_p6 = scmp.lt.u32.totalorder %s724_s13, %s957_s14 }
 0x26f   : > { %p726_p9 = pnand %p725_p8, %p1015_p12 }
 0x270   : > { %p731_p11 = por %p730_p3, %p729_p1 }
 0x271   : > { %p727_p0 = pneg %p726_p9 }
 0x272   : > { %p733_p13 = por %p732_p6, %p731_p11 }
 0x274   : > { %p734_p7 = pnand %p733_p13, %p727_p0 }
 0x276   : > { %737 = shalt.err (!%p734_p7)
}
 0x277   : > { %620 = dma.vmem_to_hbm [thread:$0]  (%p1015_p12), %s959_s23, 256, %s957_s14, %s507_s22  }
 0x278 PF: > { %s533_s10 = sand.u32 1, %s764_s18   ;;  %p1016_p10 = scmp.ne.s32.totalorder %s1011_s6, 0 }
 0x279   : > { %p1017_p2 = scmp.ge.s32.totalorder %s776_s21, 2  ;;  %s534_s11 = scalar_lea.sflag [#allocation4], %s533_s10 }
 0x27b   : > { %p627_p4 = pnand %p1017_p2, %p1016_p10 }
 0x27d   : > { %759 = dma.done.wait (!%p627_p4), %s534_s11, 256  }
 0x27e   : > { %761 = vsyncadd (!%p627_p4), %s534_s11, 4294967040  ;;  %p18_p5 = scmp.ge.s32.totalorder %s837_s24, 4   ;;  %s1018_s18 = smov %s768_s19 }
 0x27f   : > { %s1019_s19 = smov %s772_s20  ;;  %s1020_s20 = smov %s849_s27 }
 0x280   : > { %s1021_s21 = smov %s837_s24  ;;  %20 = sbr.rel (!%p18_p5) target bundleno = 5 (0x5), region = 88 }
 0x287   :  { %539 = vsyncpa [#allocation3], 1 }
 0x288   :  { %541 = vsyncpa [#allocation3 + $0x1], 1 }
 0x289   :  { %542 = vsyncpa [#allocation4], 1 }
 0x28a   :  { %544 = vsyncpa [#allocation4 + $0x1], 1 }

</bundles_post_ra>
